<compile_context>
chip_gen: v7x
topology: tpu7x:2x2x1
jax: 0.10.0
libtpu: 0.0.40
codegen_flags: <defaults>
</compile_context>

<pallas_src>
import functools

import jax
import jax.numpy as jnp
from jax.experimental import pallas as pl
from jax.experimental.pallas import tpu as pltpu

LN_EPS = 1e-5                              # PyTorch nn.LayerNorm default
LANE = 128                                 # TPU lane width
_ROW_TILE_CANDIDATES = (1024, 512, 256)    # 512-1024 rows ~= HBM roofline
_VMEM_BUDGET = 24 * 1024 * 1024            # headroom under the scoped limit
_VMEM_LIMIT = 32 * 1024 * 1024


def _round_up(x, m):
    return ((x + m - 1) // m) * m


def _choose_row_tile(rows, k_pad, h_pad, out_nbytes):
    """Rows per grid step.

    Large tiles keep the mem-bound pipeline near the HBM roofline; a tile that
    divides `rows` exactly makes the epilogue slice a free reshape; everything
    (incl. the resident, double-buffer-allocated weight) must fit VMEM.
    """
    def vmem_bytes(t):
        return (2 * t * k_pad * 2            # patch tile (bf16, double buffered)
                + 2 * k_pad * h_pad * 2      # resident weight (bf16)
                + 2 * 8 * h_pad * 4          # packed LN params (f32)
                + 2 * t * h_pad * out_nbytes)  # output tile
    cands = [c for c in _ROW_TILE_CANDIDATES if vmem_bytes(c) <= _VMEM_BUDGET]
    if not cands:
        # Very large K*hidden: the resident-weight assumption is the limit;
        # fall back to a small row tile and let the compiler complain if the
        # weight alone cannot fit (K-tiling is out of scope here).
        cands = [16]
    if rows <= cands[0]:                     # everything in one grid step
        return min(cands[0], _round_up(rows, 16))
    for c in cands:                          # prefer an exact divisor of rows
        if rows % c == 0:
            return c
    return cands[0]                          # otherwise pad rows up


def _patch_embed_kernel(p_ref, w_ref, prm_ref, o_ref, *, inv_hidden, apply_mask):
    # p_ref: (TP, Kp) bf16   w_ref: (Kp, Hp) bf16   prm_ref: (4, Hp) f32
    # o_ref: (TP, Hp)        prm rows: 0=bias 1=gamma 2=beta 3=valid-lane mask
    y = jnp.dot(p_ref[...], w_ref[...],
                preferred_element_type=jnp.float32)        # MXU, f32 accumulate
    y = y + prm_ref[0:1, :]                                # conv bias (f32)
    # Padded hidden lanes of y are exactly zero (zero-padded weight columns +
    # zero-padded bias), so the full-width sum equals the true-hidden sum.
    mean = jnp.sum(y, axis=-1, keepdims=True) * inv_hidden
    yc = y - mean
    if apply_mask:                                         # zero padded lanes so the
        yc = yc * prm_ref[3:4, :]                          # two-pass variance is exact
    var = jnp.sum(yc * yc, axis=-1, keepdims=True) * inv_hidden
    inv_std = jax.lax.rsqrt(var + LN_EPS)                  # EUP slot
    o_ref[...] = (yc * inv_std * prm_ref[1:2, :]
                  + prm_ref[2:3, :]).astype(o_ref.dtype)


@functools.partial(jax.jit, static_argnames=("patch_size", "stride", "out_dtype"))
def patch_embeddings(x, w, b, gamma, beta, *, patch_size, stride,
                     out_dtype=jnp.float32):
    """Forward pass of PatchEmbeddings.

    Args:
      x: (B, C, H, W) image (NCHW, as in the PyTorch module).
      w: (hidden, C, ps, ps) Conv2d weight.  b: (hidden,) Conv2d bias.
      gamma, beta: (hidden,) LayerNorm affine parameters.
      out_dtype: embedding dtype (f32 for PyTorch parity; bf16 halves the
        output writeback on mem-bound v6e/v7x).
    Returns:
      (embeddings (B, H_out*W_out, hidden), H_out, W_out)
    """
    pad = patch_size // 2
    B, C, H, W = x.shape
    hidden = w.shape[0]
    K = C * patch_size * patch_size
    H_out = (H + 2 * pad - patch_size) // stride + 1
    W_out = (W + 2 * pad - patch_size) // stride + 1
    P = H_out * W_out
    rows = B * P
    out_nbytes = jnp.dtype(out_dtype).itemsize

    # ---- im2col -> (rows, K) bf16 patch matrix, channel-major K -------------
    xb = x.astype(jnp.bfloat16)
    if stride == patch_size:
        # Pure layout space-to-depth: no MXU conv, no f32 intermediate.
        xp = jnp.pad(xb, ((0, 0), (0, 0), (pad, pad), (pad, pad)))
        xp = xp[:, :, :H_out * patch_size, :W_out * patch_size]
        patches = xp.reshape(B, C, H_out, patch_size, W_out, patch_size)
        patches = patches.transpose(0, 2, 4, 1, 3, 5).reshape(rows, K)
    else:
        # Generic-stride fallback; DEFAULT precision (identity filter -> the
        # kept values are exact selections even in bf16).
        patches = jax.lax.conv_general_dilated_patches(
            xb, filter_shape=(patch_size, patch_size),
            window_strides=(stride, stride),
            padding=((pad, pad), (pad, pad)),
            dimension_numbers=("NCHW", "OIHW", "NHWC")).reshape(rows, K)
        patches = patches.astype(jnp.bfloat16)

    # ---- lane-dense padding + row tiling ------------------------------------
    K_pad = _round_up(K, LANE)
    H_pad = _round_up(hidden, LANE)          # no-op when hidden % 128 == 0
    tp = _choose_row_tile(rows, K_pad, H_pad, out_nbytes)
    rows_pad = _round_up(rows, tp)
    patches = jnp.pad(patches, ((0, rows_pad - rows), (0, K_pad - K)))

    w_mat = w.reshape(hidden, K).T                                  # (K, hidden)
    w_mat = jnp.pad(w_mat, ((0, K_pad - K), (0, H_pad - hidden)))
    w_mat = w_mat.astype(jnp.bfloat16)

    # bias / gamma / beta / valid-lane mask in one operand.  Padded lanes MUST
    # stay zero — the LayerNorm statistics rely on it.
    def pad_row(v):
        return jnp.pad(v.astype(jnp.float32), (0, H_pad - hidden))

    params = jnp.stack([pad_row(b), pad_row(gamma), pad_row(beta),
                        pad_row(jnp.ones((hidden,), jnp.float32))])  # (4, H_pad)

    kernel = functools.partial(_patch_embed_kernel,
                               inv_hidden=1.0 / hidden,
                               apply_mask=(H_pad != hidden))

    # Advisory cost from TRUE dims (not padded ones).
    cost = pl.CostEstimate(
        flops=2 * rows * K * hidden,
        transcendentals=rows,
        bytes_accessed=(rows * K * 2 + K * hidden * 2 + 4 * hidden * 4
                        + rows * hidden * out_nbytes))

    out = pl.pallas_call(
        kernel,
        out_shape=jax.ShapeDtypeStruct((rows_pad, H_pad), out_dtype),
        grid_spec=pltpu.PrefetchScalarGridSpec(
            num_scalar_prefetch=0,
            grid=(rows_pad // tp,),
            in_specs=[
                pl.BlockSpec((tp, K_pad), lambda i: (i, 0)),      # patch rows
                # Constant index maps: fetched once, held resident across the
                # row grid.  (On v7x, pipeline_mode=pl.Buffered(1) on these two
                # would halve their VMEM footprint if headroom gets tight.)
                pl.BlockSpec((K_pad, H_pad), lambda i: (0, 0)),   # weight
                pl.BlockSpec((4, H_pad), lambda i: (0, 0)),       # bias/gamma/beta/mask
            ],
            out_specs=pl.BlockSpec((tp, H_pad), lambda i: (i, 0)),
        ),
        compiler_params=pltpu.CompilerParams(
            dimension_semantics=("parallel",),
            vmem_limit_bytes=_VMEM_LIMIT),
        cost_estimate=cost,
    )(patches, w_mat, params)

    # Free reshape when the row tile divides B*P and hidden % 128 == 0;
    # otherwise a single slice copy.
    emb = out[:rows, :hidden].reshape(B, P, hidden)
    return emb, H_out, W_out


def _reference(x, w, b, gamma, beta, patch_size, stride):
    """Pure-JAX f32 reference mirroring the PyTorch forward."""
    pad = patch_size // 2
    conv = jax.lax.conv_general_dilated(
        x, w, window_strides=(stride, stride),
        padding=((pad, pad), (pad, pad)),
        dimension_numbers=("NCHW", "OIHW", "NCHW"),
        precision=jax.lax.Precision.HIGHEST)
    conv = conv + b.reshape(1, -1, 1, 1)
    B, Cout, Ho, Wo = conv.shape
    emb = conv.reshape(B, Cout, Ho * Wo).transpose(0, 2, 1)     # (B, P, hidden)
    mean = emb.mean(-1, keepdims=True)
    var = ((emb - mean) ** 2).mean(-1, keepdims=True)
    emb = (emb - mean) / jnp.sqrt(var + LN_EPS)
    return emb * gamma + beta, Ho, Wo


if __name__ == "__main__":
    patch_size = 4
    stride = 4
    in_channels = 4
    hidden_size = 32
    B, H, W = 2, 16, 16

    key = jax.random.PRNGKey(0)
    kx, kw, kb, kg, kbe = jax.random.split(key, 5)
    x = jax.random.normal(kx, (B, in_channels, H, W), dtype=jnp.float32)
    w = jax.random.normal(
        kw, (hidden_size, in_channels, patch_size, patch_size),
        dtype=jnp.float32) * 0.05
    b = jax.random.normal(kb, (hidden_size,), dtype=jnp.float32) * 0.05
    gamma = jnp.ones((hidden_size,), jnp.float32) \
        + 0.01 * jax.random.normal(kg, (hidden_size,), dtype=jnp.float32)
    beta = 0.01 * jax.random.normal(kbe, (hidden_size,), dtype=jnp.float32)

    emb, h_out, w_out = patch_embeddings(
        x, w, b, gamma, beta, patch_size=patch_size, stride=stride)
    emb = jax.block_until_ready(emb)

    ref, h_ref, w_ref = _reference(x, w, b, gamma, beta, patch_size, stride)
    assert (h_out, w_out) == (h_ref, w_ref), (h_out, w_out, h_ref, w_ref)
    assert emb.shape == (B, h_ref * w_ref, hidden_size), emb.shape
    # Tolerance relaxed vs. the pure-f32 reference: matmul operands are bf16 on
    # the MXU (f32 accumulation); LN-normalized values are O(1).
    assert jnp.allclose(emb, ref, atol=3e-2, rtol=3e-2), \
        float(jnp.max(jnp.abs(emb - ref)))

    print("KERNEL_OK")
</pallas_src>

<mosaic_0001>
module attributes {stable_mosaic.version = 11 : i64} {
  func.func @_patch_embed_kernel(%arg0: i32, %arg1: memref<64x128xbf16, #tpu.memory_space<vmem>>, %arg2: memref<128x128xbf16, #tpu.memory_space<vmem>>, %arg3: memref<4x128xf32, #tpu.memory_space<vmem>>, %arg4: memref<64x128xf32, #tpu.memory_space<vmem>>) attributes {dimension_semantics = [#tpu.dimension_semantics<parallel>], iteration_bounds = array<i64: 1>, scalar_prefetch = 0 : i64, scratch_operands = 0 : i64, tpu.core_type = #tpu.core_type<tc>, window_params = [{transform_indices = @transform_0, window_bounds = array<i64: 64, 128>}, {pipeline_mode = #tpu.pipeline_mode<synchronous>, transform_indices = @transform_1, window_bounds = array<i64: 128, 128>}, {pipeline_mode = #tpu.pipeline_mode<synchronous>, transform_indices = @transform_2, window_bounds = array<i64: 4, 128>}, {transform_indices = @transform_3, window_bounds = array<i64: 64, 128>}]} {
    %c0 = arith.constant 0 : index
    %c0_0 = arith.constant 0 : index
    %0 = vector.load %arg1[%c0, %c0_0] : memref<64x128xbf16, #tpu.memory_space<vmem>>, vector<64x128xbf16>
    %c0_1 = arith.constant 0 : index
    %c0_2 = arith.constant 0 : index
    %1 = vector.load %arg2[%c0_1, %c0_2] : memref<128x128xbf16, #tpu.memory_space<vmem>>, vector<128x128xbf16>
    %cst = arith.constant dense<0.000000e+00> : vector<64x128xf32>
    %2 = tpu.matmul %0, %1, %cst {dimension_numbers = #tpu.dot_dimension_numbers<[1], [0], [0], [1], [0, 0, 1, 1], [], []>} : vector<64x128xbf16>, vector<128x128xbf16>, vector<64x128xf32> -> vector<64x128xf32>
    %c0_3 = arith.constant 0 : index
    %c0_4 = arith.constant 0 : index
    %3 = vector.load %arg3[%c0_3, %c0_4] : memref<4x128xf32, #tpu.memory_space<vmem>>, vector<1x128xf32>
    %4 = vector.broadcast %3 : vector<1x128xf32> to vector<64x128xf32>
    %5 = arith.addf %2, %4 : vector<64x128xf32>
    %cst_5 = arith.constant dense<0.000000e+00> : vector<64xf32>
    %6 = vector.multi_reduction <add>, %5, %cst_5 [1] : vector<64x128xf32> to vector<64xf32>
    %7 = vector.shape_cast %6 : vector<64xf32> to vector<64x1xf32>
    %cst_6 = arith.constant 3.125000e-02 : f32
    %8 = vector.broadcast %cst_6 : f32 to vector<64x1xf32>
    %9 = arith.mulf %7, %8 : vector<64x1xf32>
    %10 = vector.broadcast %9 : vector<64x1xf32> to vector<64x128xf32>
    %11 = arith.subf %5, %10 : vector<64x128xf32>
    %c3 = arith.constant 3 : index
    %c0_7 = arith.constant 0 : index
    %12 = vector.load %arg3[%c3, %c0_7] : memref<4x128xf32, #tpu.memory_space<vmem>>, vector<1x128xf32>
    %13 = vector.broadcast %12 : vector<1x128xf32> to vector<64x128xf32>
    %14 = arith.mulf %11, %13 : vector<64x128xf32>
    %15 = arith.mulf %14, %14 : vector<64x128xf32>
    %cst_8 = arith.constant dense<0.000000e+00> : vector<64xf32>
    %16 = vector.multi_reduction <add>, %15, %cst_8 [1] : vector<64x128xf32> to vector<64xf32>
    %17 = vector.shape_cast %16 : vector<64xf32> to vector<64x1xf32>
    %cst_9 = arith.constant 3.125000e-02 : f32
    %18 = vector.broadcast %cst_9 : f32 to vector<64x1xf32>
    %19 = arith.mulf %17, %18 : vector<64x1xf32>
    %cst_10 = arith.constant 9.99999974E-6 : f32
    %20 = vector.broadcast %cst_10 : f32 to vector<64x1xf32>
    %21 = arith.addf %19, %20 : vector<64x1xf32>
    %22 = math.rsqrt %21 : vector<64x1xf32>
    %23 = vector.broadcast %22 : vector<64x1xf32> to vector<64x128xf32>
    %24 = arith.mulf %14, %23 : vector<64x128xf32>
    %c1 = arith.constant 1 : index
    %c0_11 = arith.constant 0 : index
    %25 = vector.load %arg3[%c1, %c0_11] : memref<4x128xf32, #tpu.memory_space<vmem>>, vector<1x128xf32>
    %26 = vector.broadcast %25 : vector<1x128xf32> to vector<64x128xf32>
    %27 = arith.mulf %24, %26 : vector<64x128xf32>
    %c2 = arith.constant 2 : index
    %c0_12 = arith.constant 0 : index
    %28 = vector.load %arg3[%c2, %c0_12] : memref<4x128xf32, #tpu.memory_space<vmem>>, vector<1x128xf32>
    %29 = vector.broadcast %28 : vector<1x128xf32> to vector<64x128xf32>
    %30 = arith.addf %27, %29 : vector<64x128xf32>
    %c0_13 = arith.constant 0 : index
    %c0_14 = arith.constant 0 : index
    %31 = vector.load %arg4[%c0_13, %c0_14] : memref<64x128xf32, #tpu.memory_space<vmem>>, vector<64x128xf32>
    tpu.vector_store %arg4[%c0_13, %c0_14], %30 {strides = array<i32>} : memref<64x128xf32, #tpu.memory_space<vmem>>, vector<64x128xf32>,
    return
  }
  func.func @transform_0(%arg0: i32) -> (i32, i32) {
    %c0_i32 = arith.constant 0 : i32
    %c0_i32_0 = arith.constant 0 : i32
    return %arg0, %c0_i32 : i32, i32
  }
  func.func @transform_1(%arg0: i32) -> (i32, i32) {
    %c0_i32 = arith.constant 0 : i32
    %c0_i32_0 = arith.constant 0 : i32
    %c0_i32_1 = arith.constant 0 : i32
    return %c0_i32, %c0_i32_0 : i32, i32
  }
  func.func @transform_2(%arg0: i32) -> (i32, i32) {
    %c0_i32 = arith.constant 0 : i32
    %c0_i32_0 = arith.constant 0 : i32
    %c0_i32_1 = arith.constant 0 : i32
    return %c0_i32, %c0_i32_0 : i32, i32
  }
  func.func @transform_3(%arg0: i32) -> (i32, i32) {
    %c0_i32 = arith.constant 0 : i32
    %c0_i32_0 = arith.constant 0 : i32
    return %arg0, %c0_i32 : i32, i32
  }
}

</mosaic_0001>

<bundles_post_ra>
// kernel: patch_embeddings.1
= control target key start
LH: loop header
LB: loop body
LE: loop exit
PB: predicated region body
PF: predicated region fallthrough
CT: control target
= control target key end

     0   :  { %s548_s1 = inlined_call_operand.vmem [shape: bf16[128,128], index: 1, kind: input, shape index: {}]   ;;  %s549_s0 = inlined_call_operand.vmem [shape: bf16[64,128], index: 0, kind: input, shape index: {}]   ;;  %s550_s2 = inlined_call_operand.vmem [shape: f32[4,128], index: 2, kind: input, shape index: {}]   ;;  %s551_s3 = inlined_call_operand.vmem [shape: f32[64,128], index: 3, kind: output, shape index: {}]  }
   0x1   :  { %v388_v0 = vld [vmem:[%s548_s1] sm:$0xff]   ;;  %v389_v1 = vld [vmem:[%s548_s1 + $0x8] sm:$0xff]   ;;  %v390_v2 = vld [vmem:[%s548_s1 + $0x10] sm:$0xff]  }
   0x2   :  { %348 = vmatprep.subr.bf16.mxu0 %v388_v0  ;;  %372 = vmatprep.subr.bf16.mxu1 %v388_v0  ;;  %v391_v3 = vld [vmem:[%s548_s1 + $0x18] sm:$0xff]   ;;  %v396_v4 = vld [vmem:[%s549_s0] sm:$0xff]   ;;  %v398_v5 = vld [vmem:[%s549_s0 + $0x10] sm:$0xff]  }
   0x3   :  { %349 = vmatpush3.bf16.msra.mxu0 %v388_v0  ;;  %380 = vmatpush3.bf16.msra.mxu1 %v388_v0  ;;  %v392_v6 = vld [vmem:[%s548_s1 + $0x20] sm:$0xff]   ;;  %v393_v7 = vld [vmem:[%s548_s1 + $0x28] sm:$0xff]   ;;  %v394_v8 = vld [vmem:[%s548_s1 + $0x30] sm:$0xff]  }
   0x4   :  { %350 = vmatprep.subr.bf16.mxu0 %v389_v1  ;;  %373 = vmatprep.subr.bf16.mxu1 %v389_v1  ;;  %v395_v9 = vld [vmem:[%s548_s1 + $0x38] sm:$0xff]   ;;  %v397_v10 = vld [vmem:[%s549_s0 + $0x8] sm:$0xff]   ;;  %v320_v12 = vld [vmem:[%s550_s2] ss:$0 sm:$0xff] }
   0x5   :  { %364 = vmatprep.mubr.bf16.mxu0 %v396_v4  ;;  %368 = vmatprep.mubr.bf16.mxu1 %v398_v5  ;;  %v399_v11 = vld [vmem:[%s549_s0 + $0x18] sm:$0xff]   ;;  %v333_v33 = vld [vmem:[%s550_s2 + $0x3] ss:$0 sm:$0xff] }
   0x7   :  { %351 = vmatpush3.bf16.msra.mxu0 %v389_v1  ;;  %381 = vmatpush3.bf16.msra.mxu1 %v389_v1 }
   0x8   :  { %352 = vmatprep.subr.bf16.mxu0 %v390_v2  ;;  %374 = vmatprep.subr.bf16.mxu1 %v390_v2 }
   0xb   :  { %353 = vmatpush3.bf16.msra.mxu0 %v390_v2  ;;  %382 = vmatpush3.bf16.msra.mxu1 %v390_v2 }
   0xc   :  { %354 = vmatprep.subr.bf16.mxu0 %v391_v3  ;;  %375 = vmatprep.subr.bf16.mxu1 %v391_v3 }
   0xf   :  { %355 = vmatpush3.bf16.msra.mxu0 %v391_v3  ;;  %383 = vmatpush3.bf16.msra.mxu1 %v391_v3 }
  0x10   :  { %356 = vmatprep.subr.bf16.mxu0 %v392_v6  ;;  %376 = vmatprep.subr.bf16.mxu1 %v392_v6 }
  0x13   :  { %357 = vmatpush3.bf16.msra.mxu0 %v392_v6  ;;  %384 = vmatpush3.bf16.msra.mxu1 %v392_v6 }
  0x14   :  { %358 = vmatprep.subr.bf16.mxu0 %v393_v7  ;;  %377 = vmatprep.subr.bf16.mxu1 %v393_v7 }
  0x17   :  { %359 = vmatpush3.bf16.msra.mxu0 %v393_v7  ;;  %385 = vmatpush3.bf16.msra.mxu1 %v393_v7 }
  0x18   :  { %360 = vmatprep.subr.bf16.mxu0 %v394_v8  ;;  %378 = vmatprep.subr.bf16.mxu1 %v394_v8 }
  0x1b   :  { %361 = vmatpush3.bf16.msra.mxu0 %v394_v8  ;;  %386 = vmatpush3.bf16.msra.mxu1 %v394_v8 }
  0x1c   :  { %362 = vmatprep.subr.bf16.mxu0 %v395_v9  ;;  %379 = vmatprep.subr.bf16.mxu1 %v395_v9 }
  0x1f   :  { %363 = vmatpush3.bf16.msra.mxu0 %v395_v9  ;;  %387 = vmatpush3.bf16.msra.mxu1 %v395_v9 }
  0x22   :  { %365 = vmatmul.mubr.bf16.vlgmr.msra.gmra.mrb[0].mxu0 %v397_v10  ;;  %369 = vmatmul.mubr.bf16.vlgmr.msra.gmra.mrb[0].mxu1 %v399_v11 }
  0xf5   :  { %v366_v13 = vpop.f32.mrb[0].mxu0  ;;  %v370_v14 = vpop.f32.mrb[0].mxu1 }
  0xf6   :  { %v159_v15 = vadd.f32 %v366_v13, %v320_v12  ;;  %v150_v16 = vpop.f32.mrb[1].mxu0  ;;  %v166_v17 = vpop.f32.mrb[1].mxu1  ;;  %v175_v28 = vadd.f32 %v370_v14, %v320_v12 }
  0xf7   :  { %v151_v18 = vadd.f32 %v320_v12, %v150_v16  ;;  %v367_v19 = vpop.f32.mrb[2].mxu0  ;;  %v371_v20 = vpop.f32.mrb[2].mxu1  ;;  %v167_v23 = vadd.f32 %v320_v12, %v166_v17 }
  0xf8   :  { %185 = vadd.xlane.f32.xlu1 %v159_v15  ;;  %v153_v21 = vpop.f32.mrb[3].mxu0  ;;  %v169_v22 = vpop.f32.mrb[3].mxu1  ;;  %v162_v24 = vadd.f32 %v367_v19, %v320_v12  ;;  %v178_v27 = vadd.f32 %v371_v20, %v320_v12 }
  0xf9   :  { %181 = vadd.xlane.f32.xlu0 %v151_v18  ;;  %v170_v25 = vadd.f32 %v320_v12, %v169_v22  ;;  %v154_v26 = vadd.f32 %v320_v12, %v153_v21 }
  0xfc   :  { %187 = vadd.xlane.f32.xlu1 %v162_v24 }
  0xfd   :  { %189 = vadd.xlane.f32.xlu0 %v167_v23 }
 0x100   :  { %191 = vadd.xlane.f32.xlu1 %v170_v25 }
 0x101   :  { %183 = vadd.xlane.f32.xlu0 %v154_v26 }
 0x104   :  { %195 = vadd.xlane.f32.xlu1 %v178_v27 }
 0x105   :  { %193 = vadd.xlane.f32.xlu0 %v175_v28 }
 0x185   :  { %v186_v29 = vpop.xlane.xlu1 %185 }
 0x186   :  { %v199_v30 = vmul.f32 0.03125, %v186_v29  ;;  %v182_v31 = vpop.xlane.xlu0 %181 }
 0x187   :  { %v197_v32 = vmul.f32 0.03125, %v182_v31 }
 0x188   :  { %v207_v34 = vsub.f32 %v159_v15, %v199_v30  ;;  %v335_v30 = vld [vmem:[%s550_s2 + $0x2] ss:$0 sm:$0xff] }
 0x189   :  { %v205_v35 = vsub.f32 %v151_v18, %v197_v32  ;;  %v188_v36 = vpop.xlane.xlu1 %187 }
 0x18a   :  { %v200_v37 = vmul.f32 0.03125, %v188_v36  ;;  %v190_v38 = vpop.xlane.xlu0 %189  ;;  %v478_v39 = vmul.f32 %v333_v33, %v207_v34 }
 0x18b   :  { %v201_v40 = vmul.f32 0.03125, %v190_v38  ;;  %v482_v43 = vmul.f32 %v333_v33, %v205_v35 }
 0x18c   :  { %v208_v41 = vsub.f32 %v162_v24, %v200_v37  ;;  %v228_v42 = vmul.f32 %v478_v39, %v478_v39 }
 0x18d   :  { %v209_v44 = vsub.f32 %v167_v23, %v201_v40  ;;  %v192_v45 = vpop.xlane.xlu1 %191  ;;  %v226_v51 = vmul.f32 %v482_v43, %v482_v43 }
 0x18e   :  { %v202_v46 = vmul.f32 0.03125, %v192_v45  ;;  %238 = vadd.xlane.f32.xlu0 %v228_v42  ;;  %v184_v47 = vpop.xlane.xlu0 %183  ;;  %v484_v48 = vmul.f32 %v333_v33, %v208_v41 }
 0x18f   :  { %v198_v49 = vmul.f32 0.03125, %v184_v47  ;;  %v490_v52 = vmul.f32 %v333_v33, %v209_v44 }
 0x190   :  { %v229_v50 = vmul.f32 %v484_v48, %v484_v48  ;;  %v210_v53 = vsub.f32 %v170_v25, %v202_v46 }
 0x191   :  { %v206_v54 = vsub.f32 %v154_v26, %v198_v49  ;;  %v196_v55 = vpop.xlane.xlu1 %195  ;;  %v230_v60 = vmul.f32 %v490_v52, %v490_v52  ;;  %v334_v26 = vld [vmem:[%s550_s2 + $0x1] ss:$0 sm:$0xff] }
 0x192   :  { %v204_v56 = vmul.f32 0.03125, %v196_v55  ;;  %240 = vadd.xlane.f32.xlu1 %v229_v50  ;;  %234 = vadd.xlane.f32.xlu0 %v226_v51  ;;  %v194_v57 = vpop.xlane.xlu0 %193  ;;  %v498_v0 = vmul.f32 %v333_v33, %v210_v53 }
 0x193   :  { %v203_v58 = vmul.f32 0.03125, %v194_v57  ;;  %v492_v59 = vmul.f32 %v333_v33, %v206_v54 }
 0x194   :  { %v212_v61 = vsub.f32 %v178_v27, %v204_v56  ;;  %v231_v2 = vmul.f32 %v498_v0, %v498_v0 }
 0x195   :  { %v211_v62 = vsub.f32 %v175_v28, %v203_v58  ;;  %v227_v63 = vmul.f32 %v492_v59, %v492_v59 }
 0x196   :  { %242 = vadd.xlane.f32.xlu0 %v230_v60  ;;  %v506_v4 = vmul.f32 %v333_v33, %v212_v61 }
 0x197   :  { %236 = vadd.xlane.f32.xlu1 %v227_v63  ;;  %v500_v1 = vmul.f32 %v333_v33, %v211_v62 }
 0x198   :  { %v233_v5 = vmul.f32 %v506_v4, %v506_v4 }
 0x199   :  { %v232_v3 = vmul.f32 %v500_v1, %v500_v1 }
 0x19b   :  { %244 = vadd.xlane.f32.xlu1 %v231_v2  ;;  %246 = vadd.xlane.f32.xlu0 %v232_v3 }
 0x19f   :  { %248 = vadd.xlane.f32.xlu1 %v233_v5 }
 0x21b   :  { %v239_v6 = vpop.xlane.xlu0 %238 }
 0x21c   :  { %v252_v7 = vmul.f32 0.03125, %v239_v6 }
 0x21e   :  { %v260_v8 = vadd.f32 1e-05, %v252_v7 }
 0x21f   :  { %v241_v9 = vpop.xlane.xlu1 %240  ;;  %v235_v10 = vpop.xlane.xlu0 %234 }
 0x220   :  { %400 = vrsqrt.f32 %v260_v8  ;;  %v253_v11 = vmul.f32 0.03125, %v241_v9  ;;  %v250_v12 = vmul.f32 0.03125, %v235_v10 }
 0x222   :  { %v261_v13 = vadd.f32 1e-05, %v253_v11  ;;  %v258_v14 = vadd.f32 1e-05, %v250_v12 }
 0x223   :  { %v243_v15 = vpop.xlane.xlu0 %242 }
 0x224   :  { %402 = vrsqrt.f32 %v261_v13  ;;  %v254_v16 = vmul.f32 0.03125, %v243_v15  ;;  %v237_v17 = vpop.xlane.xlu1 %236 }
 0x225   :  { %404 = vrsqrt.f32 %v258_v14  ;;  %v251_v18 = vmul.f32 0.03125, %v237_v17 }
 0x226   :  { %v262_v19 = vadd.f32 1e-05, %v254_v16 }
 0x227   :  { %v259_v20 = vadd.f32 1e-05, %v251_v18 }
 0x228   :  { %406 = vrsqrt.f32 %v262_v19  ;;  %v245_v21 = vpop.xlane.xlu1 %244  ;;  %v247_v22 = vpop.xlane.xlu0 %246 }
 0x229   :  { %408 = vrsqrt.f32 %v259_v20  ;;  %v255_v23 = vmul.f32 0.03125, %v245_v21  ;;  %v256_v24 = vmul.f32 0.03125, %v247_v22 }
 0x22a   :  { %v401_v25 = vpop.eup %400 }
 0x22b   :  { %v276_v27 = vmul.f32 %v401_v25, %v478_v39  ;;  %v263_v28 = vadd.f32 1e-05, %v255_v23  ;;  %v264_v29 = vadd.f32 1e-05, %v256_v24 }
 0x22c   :  { %v249_v31 = vpop.xlane.xlu1 %248 }
 0x22d   :  { %v289_v32 = vmul.f32 %v334_v26, %v276_v27  ;;  %410 = vrsqrt.f32 %v263_v28  ;;  %v257_v33 = vmul.f32 0.03125, %v249_v31 }
 0x22e   :  { %v403_v34 = vpop.eup %402  ;;  %412 = vrsqrt.f32 %v264_v29 }
 0x22f   :  { %v405_v35 = vpop.eup %404  ;;  %v302_v36 = vadd.f32 %v335_v30, %v289_v32  ;;  %v277_v37 = vmul.f32 %v403_v34, %v484_v48  ;;  %v265_v38 = vadd.f32 1e-05, %v257_v33 }
 0x230   :  { %v274_v40 = vmul.f32 %v405_v35, %v482_v43 }
 0x231   :  { %310 = vst [vmem:[%s551_s3 + $0x10] sm:$0xff] %v302_v36  ;;  %v290_v39 = vmul.f32 %v334_v26, %v277_v37  ;;  %414 = vrsqrt.f32 %v265_v38 }
 0x232   :  { %v407_v41 = vpop.eup %406  ;;  %v287_v42 = vmul.f32 %v334_v26, %v274_v40 }
 0x233   :  { %v409_v44 = vpop.eup %408  ;;  %v303_v45 = vadd.f32 %v335_v30, %v290_v39  ;;  %v278_v46 = vmul.f32 %v407_v41, %v490_v52 }
 0x234   :  { %v300_v47 = vadd.f32 %v335_v30, %v287_v42  ;;  %v275_v49 = vmul.f32 %v409_v44, %v492_v59 }
 0x235   :  { %311 = vst [vmem:[%s551_s3 + $0x18] sm:$0xff] %v303_v45  ;;  %v291_v43 = vmul.f32 %v334_v26, %v278_v46 }
 0x236   :  { %308 = vst [vmem:[%s551_s3] sm:$0xff] %v300_v47  ;;  %v288_v48 = vmul.f32 %v334_v26, %v275_v49 }
 0x237   :  { %v411_v50 = vpop.eup %410  ;;  %v304_v51 = vadd.f32 %v335_v30, %v291_v43 }
 0x238   :  { %v413_v53 = vpop.eup %412  ;;  %v301_v54 = vadd.f32 %v335_v30, %v288_v48  ;;  %v279_v55 = vmul.f32 %v411_v50, %v498_v0 }
 0x239   :  { %312 = vst [vmem:[%s551_s3 + $0x20] sm:$0xff] %v304_v51  ;;  %v280_v52 = vmul.f32 %v413_v53, %v500_v1 }
 0x23a   :  { %309 = vst [vmem:[%s551_s3 + $0x8] sm:$0xff] %v301_v54  ;;  %v292_v56 = vmul.f32 %v334_v26, %v279_v55 }
 0x23b   :  { %v415_v57 = vpop.eup %414  ;;  %v293_v58 = vmul.f32 %v334_v26, %v280_v52 }
 0x23c   :  { %v305_v59 = vadd.f32 %v335_v30, %v292_v56  ;;  %v281_v60 = vmul.f32 %v415_v57, %v506_v4 }
 0x23d   :  { %v306_v61 = vadd.f32 %v335_v30, %v293_v58 }
 0x23e   :  { %313 = vst [vmem:[%s551_s3 + $0x28] sm:$0xff] %v305_v59  ;;  %v294_v62 = vmul.f32 %v334_v26, %v281_v60 }
 0x23f   :  { %314 = vst [vmem:[%s551_s3 + $0x30] sm:$0xff] %v306_v61 }
 0x240   :  { %v307_v63 = vadd.f32 %v335_v30, %v294_v62 }
 0x242   :  { %315 = vst [vmem:[%s551_s3 + $0x38] sm:$0xff] %v307_v63 }

</bundles_post_ra>
